<compile_context>
chip_gen: v6e
topology: v6e:2x2x1
jax: 0.10.0
libtpu: 0.0.40
codegen_flags: <defaults>
</compile_context>

<pallas_src>
import jax
import jax.numpy as jnp
from jax.experimental import pallas as pl
from jax.experimental.pallas import tpu as pltpu

_LANE = 128
_SUBLANE = 32                            # multiple of 8/16/32: legal for f32/bf16/int8
_TILE_BYTE_BUDGET = 8 * 1024 * 1024      # per tile; 2x double-buffered in+out = 32 MiB
_VMEM_LIMIT_BYTES = 40 * 1024 * 1024     # below v7x's 64 MiB physical; fine on v5e/v6e
_SUB_BYTE_DTYPES = {"int4", "uint4", "int2", "uint2", "float4_e2m1fn"}


def _copy_kernel(x_ref, o_ref):
    # Pure VMEM tile copy (vld/vst); the kernel is HBM/DMA-bound, nothing else to do.
    o_ref[...] = x_ref[...]


def _choose_cols(n):
    # Largest lane-dense width (multiple of 128) that divides the flat size.
    for cand in (4096, 2048, 1024, 512, 256, 128):
        if n % cand == 0:
            return cand
    return 0  # unreachable when n % 128 == 0


def _round_up(v, m):
    return ((v + m - 1) // m) * m


def identity(x, materialize=False):
    """Identity forward pass.

    Default: return `x` unchanged (zero HBM traffic, the true optimum).
    materialize=True: bit-exact copy through a Pallas TPU kernel.
    """
    if not materialize:
        return x

    n = x.size
    if n == 0:
        return x
    if x.dtype.name in _SUB_BYTE_DTYPES:
        # TODO(synk): packed sub-byte dtypes need a dedicated layout-aware copy.
        return x
    if n % _LANE != 0:
        # Ragged flat size: a padded copy would ~3x the HBM traffic, so skip
        # the Pallas path (still exact Identity semantics).
        return x

    itemsize = jnp.dtype(x.dtype).itemsize
    cols = _choose_cols(n)
    rows = n // cols
    x2 = x.reshape(rows, cols)

    if rows <= _SUBLANE:
        # Full-height block: always a legal block shape, and tiny.
        br = rows
    else:
        budget_rows = max(
            _SUBLANE,
            (_TILE_BYTE_BUDGET // (cols * itemsize)) // _SUBLANE * _SUBLANE,
        )
        # Cap br so there are at least 2 grid steps -> both v7x TensorCores /
        # megacore share the copy, and the pipeline actually overlaps DMAs.
        split_rows = _round_up((rows + 1) // 2, _SUBLANE)
        br = max(_SUBLANE, min(budget_rows, split_rows))

    grid = (pl.cdiv(rows, br),)  # ragged last row-block is masked by Pallas

    out2 = pl.pallas_call(
        _copy_kernel,
        out_shape=jax.ShapeDtypeStruct((rows, cols), x.dtype),
        grid=grid,
        in_specs=[pl.BlockSpec((br, cols), lambda i: (i, 0))],
        out_specs=pl.BlockSpec((br, cols), lambda i: (i, 0)),
        compiler_params=pltpu.CompilerParams(
            dimension_semantics=("parallel",),
            vmem_limit_bytes=_VMEM_LIMIT_BYTES,
        ),
    )(x2)

    return out2.reshape(x.shape)


if __name__ == "__main__":
    key = jax.random.PRNGKey(0)
    x = jax.random.normal(key, (2, 4, 16, 16), dtype=jnp.float32)  # NCHW

    # Default path: the real Identity optimum (no copy at all).
    y_fast = identity(x)
    assert y_fast is x

    # Materialized path: exercise the Pallas copy kernel once.
    y = identity(x, materialize=True)
    jax.block_until_ready(y)

    assert y.shape == x.shape
    assert y.dtype == x.dtype
    assert bool(jnp.array_equal(y, x))  # input has no NaNs; exact copy expected

    print("KERNEL_OK")
</pallas_src>

<mosaic_0001>
module attributes {stable_mosaic.version = 11 : i64} {
  func.func @_copy_kernel(%arg0: i32, %arg1: memref<1x2048xf32, #tpu.memory_space<vmem>>, %arg2: memref<1x2048xf32, #tpu.memory_space<vmem>>) attributes {dimension_semantics = [#tpu.dimension_semantics<parallel>], iteration_bounds = array<i64: 1>, scalar_prefetch = 0 : i64, scratch_operands = 0 : i64, tpu.core_type = #tpu.core_type<tc>, window_params = [{transform_indices = @transform_0, window_bounds = array<i64: 1, 2048>}, {transform_indices = @transform_1, window_bounds = array<i64: 1, 2048>}]} {
    %c0 = arith.constant 0 : index
    %c0_0 = arith.constant 0 : index
    %0 = vector.load %arg1[%c0, %c0_0] : memref<1x2048xf32, #tpu.memory_space<vmem>>, vector<1x2048xf32>
    %c0_1 = arith.constant 0 : index
    %c0_2 = arith.constant 0 : index
    %1 = vector.load %arg2[%c0_1, %c0_2] : memref<1x2048xf32, #tpu.memory_space<vmem>>, vector<1x2048xf32>
    tpu.vector_store %arg2[%c0_1, %c0_2], %0 {strides = array<i32>} : memref<1x2048xf32, #tpu.memory_space<vmem>>, vector<1x2048xf32>,
    return
  }
  func.func @transform_0(%arg0: i32) -> (i32, i32) {
    %c0_i32 = arith.constant 0 : i32
    %c0_i32_0 = arith.constant 0 : i32
    return %arg0, %c0_i32 : i32, i32
  }
  func.func @transform_1(%arg0: i32) -> (i32, i32) {
    %c0_i32 = arith.constant 0 : i32
    %c0_i32_0 = arith.constant 0 : i32
    return %arg0, %c0_i32 : i32, i32
  }
}

</mosaic_0001>

<bundles_post_ra>
// kernel: tpu_custom_call.1
= control target key start
LH: loop header
LB: loop body
LE: loop exit
PB: predicated region body
PF: predicated region fallthrough
CT: control target
= control target key end

     0   :  { %6 = vsyncpa [#allocation3], 0  ;;  %s104_s0 = inlined_call_operand.hbm [shape: f32[1,2048], index: 0, kind: input, shape index: {}]   ;;  %s105_s1 = inlined_call_operand.hbm [shape: f32[1,2048], index: 1, kind: output, shape index: {}]  }
   0x1   :  { %7 = vsyncpa [#allocation4], 0  ;;  %s86_s6 = smov [#allocation2]  }
   0x2   :  { %s14_s7 = sshll.u32 %s86_s6, 4  ;;  %s15_s7 = int_to_ptr.vmem [resolvable:$true] %s14_s7 }
   0x3   :  { %s50_s8 = scalar_lea.vmem %s15_s7, 256  ;;  %p55_p1 = scmp.lt.s32.totalorder %s15_s7, %s15_s7 }
   0x4   :  { %p51_p0 = scmp.ne.s32.totalorder %s15_s7, %s50_s8  ;;  %p56_p2 = scmp.lt.s32.totalorder %s50_s8, %s50_s8 }
   0x6   :  { %p57_p3 = por %p56_p2, %p55_p1 }
   0x8   :  { %p58_p4 = pnand %p57_p3, %p51_p0 }
   0xa   :  { %61 = shalt.err (!%p58_p4)
}
   0xb   :  { %17 = dma.hbm_to_vmem [thread:$0]  %s104_s0, 256, %s15_s7, [#allocation3]  }
   0xc   :  { %82 = dma.done.wait [#allocation3], 256  }
   0xd   :  { %83 = vsyncadd [#allocation3], 4294967040  ;;  %s87_s11 = smov [#allocation5]   ;;  %v21_v0 = vld [vmem:[#allocation2] sm:$0xff]  ;;  %v22_v1 = vld [vmem:[#allocation2 + $0x8] sm:$0xff] }
   0xe   :  { %s31_s12 = sshll.u32 %s87_s11, 4  ;;  %23 = vst [vmem:[#allocation5] sm:$0xff] %v21_v0  ;;  %24 = vst [vmem:[#allocation5 + $0x8] sm:$0xff] %v22_v1  ;;  %s32_s12 = int_to_ptr.vmem [resolvable:$true] %s31_s12 }
   0xf   :  { %s62_s13 = scalar_lea.vmem %s32_s12, 256  ;;  %p67_p6 = scmp.lt.s32.totalorder %s32_s12, %s32_s12 }
  0x10   :  { %p63_p5 = scmp.ne.s32.totalorder %s32_s12, %s62_s13  ;;  %p68_p7 = scmp.lt.s32.totalorder %s62_s13, %s62_s13 }
  0x12   :  { %p69_p8 = por %p68_p7, %p67_p6 }
  0x14   :  { %p70_p9 = pnand %p69_p8, %p63_p5 }
  0x16   :  { %73 = shalt.err (!%p70_p9)
}
  0x17   :  { %34 = dma.vmem_to_hbm [thread:$0]  %s32_s12, 256, %s105_s1, [#allocation4]  }
  0x18   :  { %84 = dma.done.wait [#allocation4], 256  }
  0x19   :  { %85 = vsyncadd [#allocation4], 4294967040 }
  0x1a   :  { %38 = vsyncpa [#allocation3], 1 }
  0x1b   :  { %39 = vsyncpa [#allocation4], 1 }

</bundles_post_ra>
